<compile_context>
chip_gen: v5e
topology: v5e:2x2
jax: 0.10.0
libtpu: 0.0.40
codegen_flags: <defaults>
</compile_context>

<pallas_src>
import functools

import jax
import jax.numpy as jnp
from jax.experimental import pallas as pl
from jax.experimental.pallas import tpu as pltpu

_LANES = 128      # lane width: every layer width is padded to a multiple of this
_SUBLANES = 8     # f32 sublane count: batch tiles are multiples of this


def _round_up(x, m):
    return ((x + m - 1) // m) * m


def _dense_kernel(x_ref, w1_ref, b1_ref, w2_ref, b2_ref, w3_ref, b3_ref, o_ref):
    """Fused 3-layer MLP on one batch tile (all weights resident in VMEM).

    All weight/bias operands are pre-padded to 128-lane widths, so every
    matmul input/output is lane-dense and no relayouts are needed between
    the MXU passes.  Padded lanes stay exactly zero through the ReLUs.
    """
    x = x_ref[...]
    h1 = jnp.maximum(
        jnp.dot(x, w1_ref[...], preferred_element_type=jnp.float32) + b1_ref[...],
        0.0)
    h2 = jnp.maximum(
        jnp.dot(h1, w2_ref[...], preferred_element_type=jnp.float32) + b2_ref[...],
        0.0)
    out = jnp.dot(h2, w3_ref[...], preferred_element_type=jnp.float32) + b3_ref[...]
    o_ref[...] = out.astype(o_ref.dtype)


def prepare_params(params):
    """Zero-pad every layer width to a full 128-lane multiple, ONCE.

    Done outside the per-call forward path so padded weights are not
    re-materialized on every call.  Padding is exact: padded w1/b1 columns are
    zero (-> h1 pad lanes = ReLU(0) = 0), padded w2/w3 rows are zero (pad lanes
    contribute nothing), padded output columns are zero and sliced off.
    """
    w1, b1 = params["w1"], params["b1"]
    w2, b2 = params["w2"], params["b2"]
    w3, b3 = params["w3"], params["b3"]
    in_len = w1.shape[0]
    h1p = _round_up(max(w1.shape[1], _LANES), _LANES)
    h2p = _round_up(max(w2.shape[1], _LANES), _LANES)
    outp = _round_up(max(w3.shape[1], _LANES), _LANES)

    def pad2(a, rows, cols):
        return jnp.zeros((rows, cols), a.dtype).at[:a.shape[0], :a.shape[1]].set(a)

    # TODO(synk): optional bf16 cast of x/weights (keep f32 accumulation) for
    # v6e/v7x when the accuracy budget allows; kept f32 to match the 1e-5 check
    # and the v5e VPU path.
    return {
        "w1": pad2(w1, in_len, h1p), "b1": pad2(b1, 1, h1p),
        "w2": pad2(w2, h1p, h2p),    "b2": pad2(b2, 1, h2p),
        "w3": pad2(w3, h2p, outp),   "b3": pad2(b3, 1, outp),
    }


@functools.partial(jax.jit, static_argnames=("out_dim", "tile_b"))
def dense_net_forward(x, padded_params, out_dim=2, tile_b=512):
    """x: (B, input_len) f32; padded_params from prepare_params()."""
    B, in_len = x.shape
    w1, b1 = padded_params["w1"], padded_params["b1"]
    w2, b2 = padded_params["w2"], padded_params["b2"]
    w3, b3 = padded_params["w3"], padded_params["b3"]
    h1p, h2p, outp = w1.shape[1], w2.shape[1], w3.shape[1]

    # ---- VMEM budget (per TensorCore), with compiler headroom ---------------
    try:
        vmem_phys = int(pltpu.get_tpu_info().vmem_capacity_bytes)
    except Exception:
        vmem_phys = 64 << 20          # conservative fallback: v7x per-TC VMEM
    budget = min((vmem_phys * 3) // 4, 100 << 20)

    weight_bytes = sum(int(a.size) * a.dtype.itemsize
                       for a in (w1, b1, w2, b2, w3, b3))
    bytes_per_row = 2 * (in_len + outp) * 4   # double-buffered x + out streams

    if weight_bytes + _SUBLANES * bytes_per_row > budget:
        # TODO(synk): fall back to streaming w1 in K-tiles from HBM instead of
        # keeping all weights resident when input_len is very large.
        raise NotImplementedError(
            "resident-weight strategy does not fit the VMEM budget")

    # ---- batch tile selection -----------------------------------------------
    # Single grid step for small batches (no forced 2-way split: per-step
    # overhead dominates tiny shapes and v5e/v6e have a single TensorCore).
    tb_req = _round_up(min(tile_b, B), _SUBLANES)
    tb_cap = max(_SUBLANES,
                 ((budget - weight_bytes) // bytes_per_row) // _SUBLANES * _SUBLANES)
    tb = max(_SUBLANES, min(tb_req, tb_cap))
    b_pad = _round_up(B, tb)
    x_p = x if b_pad == B else jnp.pad(x, ((0, b_pad - B), (0, 0)))
    grid = (b_pad // tb,)

    # ---- explicit VMEM limit: 1x resident weights + 2x streamed tiles -------
    stream_bytes = 2 * tb * (in_len + outp) * 4
    act_bytes = tb * (h1p + h2p + outp) * 4
    vmem_limit = int(min(budget,
                         max(32 << 20,
                             weight_bytes + stream_bytes + 2 * act_bytes
                             + (4 << 20))))

    # Whole-array VMEM placement: these operands are outside the pipeline, so
    # exactly one copy lives in VMEM (no per-step DMA, no double buffering).
    resident = pl.BlockSpec(memory_space=pltpu.MemorySpace.VMEM)

    # TODO(synk): for very large B, pack the output lane-dense (transposed
    # (8, tb) slab with batch on lanes) to cut the padded-output HBM stream;
    # skipped here because small-B runs are fixed-overhead dominated.
    out_padded = pl.pallas_call(
        _dense_kernel,
        out_shape=jax.ShapeDtypeStruct((b_pad, outp), x.dtype),
        grid_spec=pl.GridSpec(
            grid=grid,
            in_specs=[
                pl.BlockSpec((tb, in_len), lambda i: (i, 0)),  # x tile (pipelined)
                resident, resident,   # w1, b1 (128-lane padded)
                resident, resident,   # w2, b2 (128-lane padded)
                resident, resident,   # w3, b3 (128-lane padded)
            ],
            out_specs=pl.BlockSpec((tb, outp), lambda i: (i, 0)),
        ),
        compiler_params=pltpu.CompilerParams(
            dimension_semantics=("parallel",),
            vmem_limit_bytes=vmem_limit,
        ),
    )(x_p, w1, b1, w2, b2, w3, b3)

    return out_padded[:B, :out_dim]


def init_params(key, input_len):
    """Deterministic init mimicking PyTorch nn.Linear (uniform +-1/sqrt(fan_in)).

    Weights stored as (in_features, out_features); biases as (1, out_features).
    """
    dims = [(input_len, input_len // 4),
            (input_len // 4, input_len // 16),
            (input_len // 16, 2)]
    params = {}
    keys = jax.random.split(key, 2 * len(dims))
    for idx, (fan_in, fan_out) in enumerate(dims):
        bound = 1.0 / jnp.sqrt(jnp.float32(fan_in))
        w = jax.random.uniform(keys[2 * idx], (fan_in, fan_out),
                               minval=-bound, maxval=bound, dtype=jnp.float32)
        b = jax.random.uniform(keys[2 * idx + 1], (1, fan_out),
                               minval=-bound, maxval=bound, dtype=jnp.float32)
        params[f"w{idx + 1}"] = w
        params[f"b{idx + 1}"] = b
    return params


def reference_forward(x, p):
    h1 = jnp.maximum(x @ p["w1"] + p["b1"], 0.0)
    h2 = jnp.maximum(h1 @ p["w2"] + p["b2"], 0.0)
    return h2 @ p["w3"] + p["b3"]


if __name__ == "__main__":
    key = jax.random.PRNGKey(0)
    k_x, k_p = jax.random.split(key)

    batch = 16
    input_len = 64  # -> hidden dims 16, 4, output 2

    x = jax.random.normal(k_x, (batch, input_len), dtype=jnp.float32)
    params = init_params(k_p, input_len)
    padded_params = prepare_params(params)     # one-time, outside the hot path

    out = dense_net_forward(x, padded_params, out_dim=2)
    out = jax.block_until_ready(out)

    ref = reference_forward(x, params)
    assert out.shape == (batch, 2), out.shape
    assert jnp.allclose(out, ref, atol=1e-5, rtol=1e-5), "mismatch vs reference"

    print("KERNEL_OK")
</pallas_src>

<mosaic_0001>
module attributes {stable_mosaic.version = 11 : i64} {
  func.func @_dense_kernel(%arg0: i32, %arg1: memref<16x64xf32, #tpu.memory_space<vmem>>, %arg2: memref<64x128xf32, #tpu.memory_space<vmem>>, %arg3: memref<1x128xf32, #tpu.memory_space<vmem>>, %arg4: memref<128x128xf32, #tpu.memory_space<vmem>>, %arg5: memref<1x128xf32, #tpu.memory_space<vmem>>, %arg6: memref<128x128xf32, #tpu.memory_space<vmem>>, %arg7: memref<1x128xf32, #tpu.memory_space<vmem>>, %arg8: memref<16x128xf32, #tpu.memory_space<vmem>>) attributes {dimension_semantics = [#tpu.dimension_semantics<parallel>], iteration_bounds = array<i64: 1>, scalar_prefetch = 0 : i64, scratch_operands = 0 : i64, tpu.core_type = #tpu.core_type<tc>, window_params = [{transform_indices = @transform_0, window_bounds = array<i64: 16, 64>}, {pipeline_mode = #tpu.pipeline_mode<synchronous>, transform_indices = @transform_1, window_bounds = array<i64: 64, 128>}, {pipeline_mode = #tpu.pipeline_mode<synchronous>, transform_indices = @transform_2, window_bounds = array<i64: 1, 128>}, {pipeline_mode = #tpu.pipeline_mode<synchronous>, transform_indices = @transform_3, window_bounds = array<i64: 128, 128>}, {pipeline_mode = #tpu.pipeline_mode<synchronous>, transform_indices = @transform_4, window_bounds = array<i64: 1, 128>}, {pipeline_mode = #tpu.pipeline_mode<synchronous>, transform_indices = @transform_5, window_bounds = array<i64: 128, 128>}, {pipeline_mode = #tpu.pipeline_mode<synchronous>, transform_indices = @transform_6, window_bounds = array<i64: 1, 128>}, {transform_indices = @transform_7, window_bounds = array<i64: 16, 128>}]} {
    %c0 = arith.constant 0 : index
    %c0_0 = arith.constant 0 : index
    %0 = vector.load %arg1[%c0, %c0_0] : memref<16x64xf32, #tpu.memory_space<vmem>>, vector<16x64xf32>
    %c0_1 = arith.constant 0 : index
    %c0_2 = arith.constant 0 : index
    %1 = vector.load %arg2[%c0_1, %c0_2] : memref<64x128xf32, #tpu.memory_space<vmem>>, vector<64x128xf32>
    %cst = arith.constant dense<0.000000e+00> : vector<16x128xf32>
    %2 = tpu.matmul %0, %1, %cst {dimension_numbers = #tpu.dot_dimension_numbers<[1], [0], [0], [1], [0, 0, 1, 1], [], []>} : vector<16x64xf32>, vector<64x128xf32>, vector<16x128xf32> -> vector<16x128xf32>
    %c0_3 = arith.constant 0 : index
    %c0_4 = arith.constant 0 : index
    %3 = vector.load %arg3[%c0_3, %c0_4] : memref<1x128xf32, #tpu.memory_space<vmem>>, vector<1x128xf32>
    %4 = vector.broadcast %3 : vector<1x128xf32> to vector<16x128xf32>
    %5 = arith.addf %2, %4 : vector<16x128xf32>
    %cst_5 = arith.constant 0.000000e+00 : f32
    %6 = vector.broadcast %cst_5 : f32 to vector<16x128xf32>
    %7 = arith.maximumf %5, %6 : vector<16x128xf32>
    %c0_6 = arith.constant 0 : index
    %c0_7 = arith.constant 0 : index
    %8 = vector.load %arg4[%c0_6, %c0_7] : memref<128x128xf32, #tpu.memory_space<vmem>>, vector<128x128xf32>
    %cst_8 = arith.constant dense<0.000000e+00> : vector<16x128xf32>
    %9 = tpu.matmul %7, %8, %cst_8 {dimension_numbers = #tpu.dot_dimension_numbers<[1], [0], [0], [1], [0, 0, 1, 1], [], []>} : vector<16x128xf32>, vector<128x128xf32>, vector<16x128xf32> -> vector<16x128xf32>
    %c0_9 = arith.constant 0 : index
    %c0_10 = arith.constant 0 : index
    %10 = vector.load %arg5[%c0_9, %c0_10] : memref<1x128xf32, #tpu.memory_space<vmem>>, vector<1x128xf32>
    %11 = vector.broadcast %10 : vector<1x128xf32> to vector<16x128xf32>
    %12 = arith.addf %9, %11 : vector<16x128xf32>
    %cst_11 = arith.constant 0.000000e+00 : f32
    %13 = vector.broadcast %cst_11 : f32 to vector<16x128xf32>
    %14 = arith.maximumf %12, %13 : vector<16x128xf32>
    %c0_12 = arith.constant 0 : index
    %c0_13 = arith.constant 0 : index
    %15 = vector.load %arg6[%c0_12, %c0_13] : memref<128x128xf32, #tpu.memory_space<vmem>>, vector<128x128xf32>
    %cst_14 = arith.constant dense<0.000000e+00> : vector<16x128xf32>
    %16 = tpu.matmul %14, %15, %cst_14 {dimension_numbers = #tpu.dot_dimension_numbers<[1], [0], [0], [1], [0, 0, 1, 1], [], []>} : vector<16x128xf32>, vector<128x128xf32>, vector<16x128xf32> -> vector<16x128xf32>
    %c0_15 = arith.constant 0 : index
    %c0_16 = arith.constant 0 : index
    %17 = vector.load %arg7[%c0_15, %c0_16] : memref<1x128xf32, #tpu.memory_space<vmem>>, vector<1x128xf32>
    %18 = vector.broadcast %17 : vector<1x128xf32> to vector<16x128xf32>
    %19 = arith.addf %16, %18 : vector<16x128xf32>
    %c0_17 = arith.constant 0 : index
    %c0_18 = arith.constant 0 : index
    %20 = vector.load %arg8[%c0_17, %c0_18] : memref<16x128xf32, #tpu.memory_space<vmem>>, vector<16x128xf32>
    tpu.vector_store %arg8[%c0_17, %c0_18], %19 {strides = array<i32>} : memref<16x128xf32, #tpu.memory_space<vmem>>, vector<16x128xf32>,
    return
  }
  func.func @transform_0(%arg0: i32) -> (i32, i32) {
    %c0_i32 = arith.constant 0 : i32
    %c0_i32_0 = arith.constant 0 : i32
    return %arg0, %c0_i32 : i32, i32
  }
  func.func @transform_1(%arg0: i32) -> (i32, i32) {
    %c0_i32 = arith.constant 0 : i32
    %c0_i32_0 = arith.constant 0 : i32
    %c0_i32_1 = arith.constant 0 : i32
    return %c0_i32, %c0_i32_0 : i32, i32
  }
  func.func @transform_2(%arg0: i32) -> (i32, i32) {
    %c0_i32 = arith.constant 0 : i32
    %c0_i32_0 = arith.constant 0 : i32
    %c0_i32_1 = arith.constant 0 : i32
    return %c0_i32, %c0_i32_0 : i32, i32
  }
  func.func @transform_3(%arg0: i32) -> (i32, i32) {
    %c0_i32 = arith.constant 0 : i32
    %c0_i32_0 = arith.constant 0 : i32
    %c0_i32_1 = arith.constant 0 : i32
    return %c0_i32, %c0_i32_0 : i32, i32
  }
  func.func @transform_4(%arg0: i32) -> (i32, i32) {
    %c0_i32 = arith.constant 0 : i32
    %c0_i32_0 = arith.constant 0 : i32
    %c0_i32_1 = arith.constant 0 : i32
    return %c0_i32, %c0_i32_0 : i32, i32
  }
  func.func @transform_5(%arg0: i32) -> (i32, i32) {
    %c0_i32 = arith.constant 0 : i32
    %c0_i32_0 = arith.constant 0 : i32
    %c0_i32_1 = arith.constant 0 : i32
    return %c0_i32, %c0_i32_0 : i32, i32
  }
  func.func @transform_6(%arg0: i32) -> (i32, i32) {
    %c0_i32 = arith.constant 0 : i32
    %c0_i32_0 = arith.constant 0 : i32
    %c0_i32_1 = arith.constant 0 : i32
    return %c0_i32, %c0_i32_0 : i32, i32
  }
  func.func @transform_7(%arg0: i32) -> (i32, i32) {
    %c0_i32 = arith.constant 0 : i32
    %c0_i32_0 = arith.constant 0 : i32
    return %arg0, %c0_i32 : i32, i32
  }
}

</mosaic_0001>

<bundles_post_ra>
// kernel: dense_net_forward.1
= control target key start
LH: loop header
LB: loop body
LE: loop exit
PB: predicated region body
PF: predicated region fallthrough
CT: control target
= control target key end

     0   :  { %12 = vsyncpa [#allocation3], 0  ;;  %s475_s0 = inlined_call_operand.hbm [shape: f32[16,64], index: 0, kind: input, shape index: {}]   ;;  %s476_s1 = inlined_call_operand.hbm [shape: f32[64,128], index: 1, kind: input, shape index: {}]   ;;  %s477_s2 = inlined_call_operand.hbm [shape: f32[1,128], index: 2, kind: input, shape index: {}]   ;;  %s478_s3 = inlined_call_operand.hbm [shape: f32[128,128], index: 3, kind: input, shape index: {}]   ;;  %s479_s4 = inlined_call_operand.vmem [shape: f32[1,128], index: 4, kind: input, shape index: {}]   ;;  %s480_s5 = inlined_call_operand.hbm [shape: f32[128,128], index: 5, kind: input, shape index: {}]   ;;  %s481_s6 = inlined_call_operand.vmem [shape: f32[1,128], index: 6, kind: input, shape index: {}]   ;;  %s482_s7 = inlined_call_operand.vmem [shape: f32[16,128], index: 7, kind: output, shape index: {}]  }
   0x1   :  { %13 = vsyncpa [#allocation5], 0 }
   0x2   :  { %14 = vsyncpa [#allocation8], 0  ;;  %s32_s26 = sshll.u32 %s476_s1, 4  ;;  %s399_s27 = smov [#allocation4]   ;;  %s33_s26 = int_to_ptr.hbm [resolvable:$true] %s32_s26 }
   0x3   :  { %s34_s28 = sshll.u32 %s399_s27, 4  ;;  %s56_s8 = sshll.u32 %s478_s3, 4  ;;  %s35_s28 = int_to_ptr.vmem [resolvable:$true] %s34_s28  ;;  %s57_s8 = int_to_ptr.hbm [resolvable:$true] %s56_s8 }
   0x4   :  { %s400_s9 = smov 128   ;;  %s401_s10 = smov 8  }
   0x5   :  { %40 = dma.hbm_to_vmem [thread:$0]  %s33_s26, 1024, %s35_s28, [#allocation5], %s400_s9, %s400_s9, %s401_s10  }
   0x6   :  { %s402_s11 = smov [#allocation7]   ;;  %s19_s15 = sshll.u32 %s475_s0, 4  ;;  %s20_s15 = int_to_ptr.hbm [resolvable:$true] %s19_s15 }
   0x7   :  { %s58_s12 = sshll.u32 %s402_s11, 4  ;;  %s46_s17 = sshll.u32 %s477_s2, 4  ;;  %s59_s12 = int_to_ptr.vmem [resolvable:$true] %s58_s12  ;;  %s47_s17 = int_to_ptr.hbm [resolvable:$true] %s46_s17 }
   0x8   :  { %64 = dma.hbm_to_vmem [thread:$0]  %s57_s8, 2048, %s59_s12, [#allocation8], %s400_s9, %s400_s9, %s401_s10  }
   0x9   :  { %s403_s18 = smov [#allocation2]   ;;  %s404_s3 = smov [#allocation6]  }
   0xa   :  { %s21_s19 = sshll.u32 %s403_s18, 4  ;;  %s48_s20 = sshll.u32 %s404_s3, 4  ;;  %s22_s19 = int_to_ptr.vmem [resolvable:$true] %s21_s19  ;;  %s49_s20 = int_to_ptr.vmem [resolvable:$true] %s48_s20 }
   0xb   :  { %27 = dma.hbm_to_vmem [thread:$0]  %s20_s15, 256, %s22_s19, [#allocation3], %s400_s9, %s400_s9, %s401_s10  }
   0xc   :  { %s71_s23 = sshll.u32 %s480_s5, 4  ;;  %s405_s0 = smov [#allocation9]   ;;  %s72_s23 = int_to_ptr.hbm [resolvable:$true] %s71_s23 }
   0xd   :  { %51 = dma.hbm_to_vmem [thread:$0]  %s47_s17, 16, %s49_s20, [#allocation5]  }
   0xe   :  { %s73_s24 = sshll.u32 %s405_s0, 4  ;;  %s74_s24 = int_to_ptr.vmem [resolvable:$true] %s73_s24 }
   0xf   :  { %79 = dma.hbm_to_vmem [thread:$0]  %s72_s23, 2048, %s74_s24, [#allocation8], %s400_s9, %s400_s9, %s401_s10  }
  0x10   :  { %393 = dma.done.wait [#allocation3], 256  }
  0x11   :  { %394 = vsyncadd [#allocation3], 4294967040 }
  0x12   :  { %395 = dma.done.wait [#allocation5], 1040  }
  0x13   :  { %396 = vsyncadd [#allocation5], 4294966256 }
  0x14   :  { %397 = dma.done.wait [#allocation8], 4096  }
  0x15   :  { %398 = vsyncadd [#allocation8], 4294963200  ;;  %v111_v0 = vld [vmem:[#allocation4 + $0x38] sm:$0xff]  ;;  %v110_v1 = vld [vmem:[#allocation4 + $0x30] sm:$0xff]  ;;  %vm116_vm0 = vcmask 523264  }
  0x16   :  { %131 = vmatpush.msra.mxu0 %v111_v0  ;;  %v109_v2 = vld [vmem:[#allocation4 + $0x28] sm:$0xff]  ;;  %v163_v3 = vld [vmem:[#allocation7 + $0x78] sm:$0xff]  ;;  %v162_v4 = vld [vmem:[#allocation7 + $0x70] sm:$0xff] }
  0x17   :  { %v108_v5 = vld [vmem:[#allocation4 + $0x20] sm:$0xff]  ;;  %168 = vmatpush.msra.mxu1 %v163_v3  ;;  %247 = vmatpush.msra.mxu3 %v163_v3  ;;  %v161_v6 = vld [vmem:[#allocation7 + $0x68] sm:$0xff]  ;;  %v107_v7 = vld [vmem:[#allocation4 + $0x18] sm:$0xff] }
  0x18   :  { %132 = vmatpush.msra.mxu0 %v110_v1  ;;  %v160_v8 = vld [vmem:[#allocation7 + $0x60] sm:$0xff]  ;;  %v106_v9 = vld [vmem:[#allocation4 + $0x10] sm:$0xff]  ;;  %v159_v10 = vld [vmem:[#allocation7 + $0x58] sm:$0xff] }
  0x19   :  { %169 = vmatpush.msra.mxu1 %v162_v4  ;;  %248 = vmatpush.msra.mxu3 %v162_v4  ;;  %v105_v11 = vld [vmem:[#allocation4 + $0x8] sm:$0xff]  ;;  %v158_v12 = vld [vmem:[#allocation7 + $0x50] sm:$0xff]  ;;  %v104_v13 = vld [vmem:[#allocation4] sm:$0xff] }
  0x1a   :  { %133 = vmatpush.msra.mxu0 %v109_v2  ;;  %v102_v14 = vld [vmem:[#allocation2] sm:$0xff]  ;;  %v156_v16 = vld [vmem:[#allocation7 + $0x40] sm:$0xff]  ;;  %v155_v17 = vld [vmem:[#allocation7 + $0x38] sm:$0xff] }
  0x1b   :  { %170 = vmatpush.msra.mxu1 %v161_v6  ;;  %249 = vmatpush.msra.mxu3 %v161_v6  ;;  %v157_v15 = vld [vmem:[#allocation7 + $0x48] sm:$0xff]  ;;  %v154_v18 = vld [vmem:[#allocation7 + $0x30] sm:$0xff]  ;;  %v152_v21 = vld [vmem:[#allocation7 + $0x20] sm:$0xff] }
  0x1c   :  { %134 = vmatpush.msra.mxu0 %v108_v5  ;;  %v103_v19 = vld [vmem:[#allocation2 + $0x8] sm:$0xff]  ;;  %v153_v20 = vld [vmem:[#allocation7 + $0x28] sm:$0xff]  ;;  %v148_v25 = vld [vmem:[#allocation7] sm:$0xff] }
  0x1d   :  { %171 = vmatpush.msra.mxu1 %v160_v8  ;;  %250 = vmatpush.msra.mxu3 %v160_v8  ;;  %v151_v22 = vld [vmem:[#allocation7 + $0x18] sm:$0xff]  ;;  %v150_v23 = vld [vmem:[#allocation7 + $0x10] sm:$0xff]  ;;  %v149_v24 = vld [vmem:[#allocation7 + $0x8] sm:$0xff] }
  0x1e   :  { %135 = vmatpush.msra.mxu0 %v107_v7  ;;  %v208_v26 = vld [vmem:[#allocation9 + $0x78] sm:$0xff]  ;;  %v207_v27 = vld [vmem:[#allocation9 + $0x70] sm:$0xff]  ;;  %v206_v28 = vld [vmem:[#allocation9 + $0x68] sm:$0xff] }
  0x1f   :  { %172 = vmatpush.msra.mxu1 %v159_v10  ;;  %251 = vmatpush.msra.mxu3 %v159_v10  ;;  %v205_v29 = vld [vmem:[#allocation9 + $0x60] sm:$0xff]  ;;  %v204_v30 = vld [vmem:[#allocation9 + $0x58] sm:$0xff]  ;;  %v203_v31 = vld [vmem:[#allocation9 + $0x50] sm:$0xff] }
  0x20   :  { %136 = vmatpush.msra.mxu0 %v106_v9  ;;  %213 = vmatpush.msra.mxu2 %v208_v26  ;;  %v202_v32 = vld [vmem:[#allocation9 + $0x48] sm:$0xff]  ;;  %v201_v33 = vld [vmem:[#allocation9 + $0x40] sm:$0xff]  ;;  %v200_v34 = vld [vmem:[#allocation9 + $0x38] sm:$0xff] }
  0x21   :  { %173 = vmatpush.msra.mxu1 %v158_v12  ;;  %252 = vmatpush.msra.mxu3 %v158_v12  ;;  %v270_v35 = vld [vmem:[#allocation6] ss:$0 sm:$0xff]  ;;  %v199_v36 = vld [vmem:[#allocation9 + $0x30] sm:$0xff]  ;;  %v198_v37 = vld [vmem:[#allocation9 + $0x28] sm:$0xff] }
  0x22   :  { %137 = vmatpush.msra.mxu0 %v105_v11  ;;  %214 = vmatpush.msra.mxu2 %v207_v27  ;;  %v197_v40 = vld [vmem:[#allocation9 + $0x20] sm:$0xff]  ;;  %v196_v42 = vld [vmem:[#allocation9 + $0x18] sm:$0xff]  ;;  %v195_v46 = vld [vmem:[#allocation9 + $0x10] sm:$0xff] }
  0x23   :  { %174 = vmatpush.msra.mxu1 %v157_v15  ;;  %253 = vmatpush.msra.mxu3 %v157_v15  ;;  %v194_v47 = vld [vmem:[#allocation9 + $0x8] sm:$0xff]  ;;  %v193_v48 = vld [vmem:[#allocation9] sm:$0xff] }
  0x24   :  { %138 = vmatpush.msra.mxu0 %v104_v13  ;;  %215 = vmatpush.msra.mxu2 %v206_v28  ;;  %v271_v49 = vld [vmem:[%s479_s4] ss:$0 sm:$0xff] }
  0x25   :  { %245 = vmatmul.msk.f32.vlgmr.msra.gmra.mxu0 %vm116_vm0, %v102_v14  ;;  %175 = vmatpush.msra.mxu1 %v156_v16  ;;  %v272_v56 = vld [vmem:[%s481_s6] ss:$0 sm:$0xff] }
  0x26   :  { %254 = vmatpush.msra.mxu3 %v156_v16  ;;  %216 = vmatpush.msra.mxu2 %v205_v29 }
  0x27   :  { %176 = vmatpush.msra.mxu1 %v155_v17 }
  0x28   :  { %255 = vmatpush.msra.mxu3 %v155_v17  ;;  %217 = vmatpush.msra.mxu2 %v204_v30 }
  0x29   :  { %177 = vmatpush.msra.mxu1 %v154_v18 }
  0x2a   :  { %256 = vmatpush.msra.mxu3 %v154_v18  ;;  %218 = vmatpush.msra.mxu2 %v203_v31 }
  0x2b   :  { %178 = vmatpush.msra.mxu1 %v153_v20 }
  0x2c   :  { %257 = vmatpush.msra.mxu3 %v153_v20  ;;  %219 = vmatpush.msra.mxu2 %v202_v32 }
  0x2d   :  { %246 = vmatmul.msk.f32.gmra.mxu0 %vm116_vm0, %v103_v19  ;;  %179 = vmatpush.msra.mxu1 %v152_v21 }
  0x2e   :  { %258 = vmatpush.msra.mxu3 %v152_v21  ;;  %220 = vmatpush.msra.mxu2 %v201_v33 }
  0x2f   :  { %180 = vmatpush.msra.mxu1 %v151_v22 }
  0x30   :  { %259 = vmatpush.msra.mxu3 %v151_v22  ;;  %221 = vmatpush.msra.mxu2 %v200_v34 }
  0x31   :  { %181 = vmatpush.msra.mxu1 %v150_v23 }
  0x32   :  { %260 = vmatpush.msra.mxu3 %v150_v23  ;;  %222 = vmatpush.msra.mxu2 %v199_v36 }
  0x33   :  { %182 = vmatpush.msra.mxu1 %v149_v24 }
  0x34   :  { %261 = vmatpush.msra.mxu3 %v149_v24  ;;  %223 = vmatpush.msra.mxu2 %v198_v37 }
  0x35   :  { %183 = vmatpush.msra.mxu1 %v148_v25 }
  0x36   :  { %262 = vmatpush.msra.mxu3 %v148_v25  ;;  %224 = vmatpush.msra.mxu2 %v197_v40 }
  0x38   :  { %225 = vmatpush.msra.mxu2 %v196_v42 }
  0x3a   :  { %226 = vmatpush.msra.mxu2 %v195_v46 }
  0x3c   :  { %227 = vmatpush.msra.mxu2 %v194_v47 }
  0x3e   :  { %228 = vmatpush.msra.mxu2 %v193_v48 }
  0xa2   :  { %v140_v38 = vpop.f32.mrf.mxu0 }
  0xa3   :  { %v141_v39 = vadd.f32 %v270_v35, %v140_v38 }
  0xa5   :  { %v146_v41 = vmax.f32 %v141_v39, 0.0 }
  0xa7   :  { %184 = vmatmul.f32.vlgmr.msra.gmra.mxu1 %v146_v41 }
  0xaa   :  { %v143_v43 = vpop.f32.mrf.mxu0 }
  0xab   :  { %v144_v44 = vadd.f32 %v270_v35, %v143_v43 }
  0xad   :  { %v147_v45 = vmax.f32 %v144_v44, 0.0 }
  0xaf   :  { %187 = vmatmul.f32.vlgmr.msra.gmra.mxu3 %v147_v45 }
 0x124   :  { %v185_v50 = vpop.f32.mrf.mxu1 }
 0x125   :  { %v186_v51 = vadd.f32 %v271_v49, %v185_v50 }
 0x127   :  { %v191_v52 = vmax.f32 %v186_v51, 0.0 }
 0x129   :  { %229 = vmatmul.f32.vlgmr.msra.gmra.mxu2 %v191_v52 }
 0x132   :  { %v188_v53 = vpop.f32.mrf.mxu3 }
 0x133   :  { %v189_v54 = vadd.f32 %v271_v49, %v188_v53 }
 0x135   :  { %v192_v55 = vmax.f32 %v189_v54, 0.0 }
 0x137   :  { %232 = vmatmul.f32.gmra.mxu2 %v192_v55 }
 0x1ac   :  { %v230_v57 = vpop.f32.mrf.mxu2 }
 0x1ad   :  { %v231_v58 = vadd.f32 %v272_v56, %v230_v57 }
 0x1af   :  { %236 = vst [vmem:[%s482_s7] sm:$0xff] %v231_v58 }
 0x1ba   :  { %v233_v59 = vpop.f32.mrf.mxu2 }
 0x1bb   :  { %v234_v60 = vadd.f32 %v272_v56, %v233_v59 }
 0x1bd   :  { %237 = vst [vmem:[%s482_s7 + $0x8] sm:$0xff] %v234_v60 }
 0x1be   :  { %242 = vsyncpa [#allocation3], 1 }
 0x1bf   :  { %243 = vsyncpa [#allocation5], 1 }
 0x1c0   :  { %244 = vsyncpa [#allocation8], 1 }

</bundles_post_ra>
